<compile_context>
chip_gen: v7x
topology: tpu7x:2x2x1
jax: 0.10.0
libtpu: 0.0.40
codegen_flags: <defaults>
</compile_context>

<pallas_src>
import functools

import jax
import jax.numpy as jnp
import numpy as np
from jax.experimental import pallas as pl
from jax.experimental.pallas import tpu as pltpu

MOVING_AVG = 25                 # decomp_enc default
_LANE = 128                     # TPU lane width (last-dim vreg extent)
_SMALL_INPUT_BYTES = 1 << 20    # below this, pallas_call overhead dominates


# ---------------------------------------------------------------------------
# Banded averaging matrix: mean = A @ x reproduces AvgPool1d(stride=1) over a
# replicate-edge padded sequence (Autoformer series_decomp semantics).
# ---------------------------------------------------------------------------
def _build_avg_matrix(l, kernel_size):
    pad = (kernel_size - 1) // 2
    a = np.zeros((l, l), np.float32)
    rows = np.arange(l)[:, None]                                    # (L, 1)
    cols = np.clip(rows + np.arange(kernel_size)[None, :] - pad, 0, l - 1)
    np.add.at(a, (np.broadcast_to(rows, cols.shape), cols), 1.0 / kernel_size)
    return jnp.asarray(a)


# ---------------------------------------------------------------------------
# Kernels.  Both operate on a 2-D (L, lanes) tile (batch dim squeezed away or
# folded into lanes by the wrapper) and write residual + mean.
# ---------------------------------------------------------------------------
def _decomp_matmul_kernel(a_ref, x_ref, res_ref, mean_ref):
    xf = x_ref[...].astype(jnp.float32)
    mean = jnp.dot(a_ref[...], xf,
                   preferred_element_type=jnp.float32,
                   precision=jax.lax.Precision.HIGHEST)
    res_ref[...] = (xf - mean).astype(res_ref.dtype)
    mean_ref[...] = mean.astype(mean_ref.dtype)


def _decomp_taps_kernel(x_ref, res_ref, mean_ref, *, kernel_size):
    # Exact k-tap shifted add (no prefix-sum cancellation); replicate-edge
    # padding is built in VMEM only.
    xf = x_ref[...].astype(jnp.float32)
    l, c = xf.shape
    pad = (kernel_size - 1) // 2
    xp = jnp.concatenate(
        [jnp.broadcast_to(xf[:1, :], (pad, c)),
         xf,
         jnp.broadcast_to(xf[l - 1:l, :], (pad, c))], axis=0)
    acc = xp[0:l, :]
    for k in range(1, kernel_size):
        acc = acc + xp[k:k + l, :]
    mean = acc * (1.0 / kernel_size)
    res_ref[...] = (xf - mean).astype(res_ref.dtype)
    mean_ref[...] = mean.astype(mean_ref.dtype)


# ---------------------------------------------------------------------------
# Generation-aware tiling.
# ---------------------------------------------------------------------------
def _vmem_capacity_bytes():
    try:
        return int(pltpu.get_tpu_info().vmem_capacity_bytes)
    except Exception:
        return 64 * 1024 * 1024     # assume the smallest targeted gen (v7x)


def _pick_lane_tile(l, c, itemsize, fixed_bytes, budget_bytes):
    """Largest lane tile (multiple of 128 dividing c) fitting the VMEM budget."""
    if c % _LANE != 0:
        # TODO(synk): halo / padded lane tiling for non-128-multiple channel
        # counts that do not fit VMEM; not needed at this module's shapes.
        return c
    # Resident bytes per lane column per grid step: double-buffered input,
    # two double-buffered outputs, ~3 f32-sized in-kernel temporaries.
    per_col = l * (2 * itemsize + 4 * itemsize + 3 * 4)
    avail = max(budget_bytes - fixed_bytes, per_col * _LANE)
    tile = min(c, max((avail // per_col) // _LANE, 1) * _LANE)
    while c % tile != 0:
        tile -= _LANE
    return max(tile, _LANE)


# ---------------------------------------------------------------------------
# series_decomp: Pallas path + tiny-input XLA fast path.
# ---------------------------------------------------------------------------
def _series_decomp_pallas(x, kernel_size, force_path=None):
    b, l, d = x.shape
    itemsize = jnp.dtype(x.dtype).itemsize

    vmem_cap = _vmem_capacity_bytes()
    vmem_limit = min(vmem_cap * 3 // 4, 64 * 1024 * 1024)
    budget = int(vmem_limit * 0.8)

    a_resident = 2 * l * l * 4                 # A gets double-buffered too
    if force_path is None:
        use_matmul = a_resident <= budget // 3
    else:
        use_matmul = (force_path == "matmul")
    fixed = a_resident if use_matmul else 0

    if d % _LANE == 0:
        # ---- Layout A: keep (B, L, D); per-batch blocks, lane-dense D tiles.
        d_tile = _pick_lane_tile(l, d, itemsize, fixed, budget)
        nd = d // d_tile
        # v7x has 2 TensorCores: expose >= 2 'parallel' steps even for B == 1.
        if b == 1 and nd == 1 and d_tile % (2 * _LANE) == 0:
            d_tile //= 2
            nd = 2
        grid = (b, nd)
        dims = ("parallel", "parallel")
        x_spec = pl.BlockSpec((None, l, d_tile), lambda i, j: (i, 0, j))
        o_spec = pl.BlockSpec((None, l, d_tile), lambda i, j: (i, 0, j))
        a_spec = pl.BlockSpec((l, l), lambda i, j: (0, 0))
        out_sds = jax.ShapeDtypeStruct((b, l, d), x.dtype)
        x_in = x
        unfold = lambda y: y
    else:
        # ---- Layout B: fold batch into the lane axis -> (L, B*D) so stores
        # are as lane-dense as the channel count allows (free when B == 1).
        c = b * d
        x_in = (jnp.swapaxes(x, 0, 1).reshape(l, c) if b > 1
                else x.reshape(l, c))
        c_tile = _pick_lane_tile(l, c, itemsize, fixed, budget)
        nc = c // c_tile
        if nc == 1 and c % _LANE == 0 and c_tile % (2 * _LANE) == 0:
            c_tile //= 2
            nc = 2
        grid = (nc,)
        dims = ("parallel",)
        x_spec = pl.BlockSpec((l, c_tile), lambda j: (0, j))
        o_spec = pl.BlockSpec((l, c_tile), lambda j: (0, j))
        a_spec = pl.BlockSpec((l, l), lambda j: (0, 0))
        out_sds = jax.ShapeDtypeStruct((l, c), x.dtype)
        if b > 1:
            unfold = lambda y: jnp.swapaxes(y.reshape(l, b, d), 0, 1)
        else:
            unfold = lambda y: y.reshape(b, l, d)

    if use_matmul:
        kern = _decomp_matmul_kernel
        in_specs = [a_spec, x_spec]
        operands = (_build_avg_matrix(l, kernel_size), x_in)
    else:
        # Fallback for very long L where the (L, L) matrix no longer fits.
        # TODO(synk): (kernel_size-1)-halo L-tiling for L so large that even a
        # 128-lane full-L block exceeds VMEM.
        kern = functools.partial(_decomp_taps_kernel, kernel_size=kernel_size)
        in_specs = [x_spec]
        operands = (x_in,)

    res, mean = pl.pallas_call(
        kern,
        out_shape=(out_sds, out_sds),
        grid_spec=pltpu.PrefetchScalarGridSpec(
            num_scalar_prefetch=0,
            grid=grid,
            in_specs=in_specs,
            out_specs=[o_spec, o_spec],
        ),
        compiler_params=pltpu.CompilerParams(
            dimension_semantics=dims,
            vmem_limit_bytes=vmem_limit,
        ),
    )(*operands)
    return unfold(res), unfold(mean)


def _series_decomp_jnp(x, kernel_size):
    # Plain-JAX exact reference / tiny-input path.
    pad = (kernel_size - 1) // 2
    l = x.shape[1]
    xf = x.astype(jnp.float32)
    xp = jnp.concatenate(
        [jnp.repeat(xf[:, :1], pad, axis=1), xf,
         jnp.repeat(xf[:, -1:], pad, axis=1)], axis=1)
    win = jnp.stack([xp[:, k:k + l] for k in range(kernel_size)], axis=0)
    mean = jnp.mean(win, axis=0)
    res = xf - mean
    return res.astype(x.dtype), mean.astype(x.dtype)


def series_decomp(x, kernel_size=MOVING_AVG, *, force_pallas=False,
                  _force_path=None):
    """Autoformer series decomposition: returns (residual, moving_mean)."""
    assert kernel_size % 2 == 1, (
        "series_decomp: moving_avg must be odd (replicate-pad semantics only "
        "match AvgPool1d output length for odd kernels)")
    b, l, d = x.shape
    nbytes = b * l * d * jnp.dtype(x.dtype).itemsize
    if not force_pallas and nbytes < _SMALL_INPUT_BYTES:
        # pallas_call fixed + per-grid-step overhead dominates tiny inputs.
        return _series_decomp_jnp(x, kernel_size)
    return _series_decomp_pallas(x, kernel_size, force_path=_force_path)


# ---------------------------------------------------------------------------
# Module wrapper mirroring decomp_enc (default empty_layer sub-layers).
# ---------------------------------------------------------------------------
class DecompEnc:
    def __init__(self, moving_avg=25):
        # static_enrichment / encoder_attention / decoder_attention default to
        # empty_layer: identity, no parameters, attns=None -> no kernels.
        # TODO(synk): non-default registry-built attention / enrichment layers
        # are config-dependent and unspecified; only the default path is here.
        self.moving_avg = moving_avg

    def decomp(self, x, **kw):
        # series_decomp(moving_avg) is built in __init__ but never invoked by
        # the reference forward(); exposed as the module's real compute.
        return series_decomp(x, self.moving_avg, **kw)

    def __call__(self, x):
        enc_in = x['encoded_data']
        # encoder_attention == empty_layer: identity, attns=None.  Alias (no
        # copy kernel): a semantic no-op must not cost an HBM read+write.
        enc_out, attns = enc_in, None
        x['attn_data'] = enc_out
        return x


# ---------------------------------------------------------------------------
# Self test.
# ---------------------------------------------------------------------------
def _check_decomp(res, mean, x, kernel_size, name, tol=2e-3):
    res = jax.block_until_ready(res)
    mean = jax.block_until_ready(mean)
    res_ref, mean_ref = _series_decomp_jnp(x, kernel_size)
    assert res.shape == x.shape and mean.shape == x.shape, f"{name}: shape"
    assert jnp.allclose(mean, mean_ref, atol=tol, rtol=tol), \
        f"{name}: moving-average mismatch"
    assert jnp.allclose(res, res_ref, atol=tol, rtol=tol), \
        f"{name}: residual mismatch"


if __name__ == "__main__":
    key = jax.random.PRNGKey(0)
    module = DecompEnc(moving_avg=MOVING_AVG)

    # ---- forward pass (exact reference semantics: identity pass-through) ----
    B, L, D = 2, 32, 32
    enc_in = jax.random.normal(key, (B, L, D), dtype=jnp.float32)
    out_dict = module({'encoded_data': enc_in})
    attn_data = jax.block_until_ready(out_dict['attn_data'])
    assert attn_data.shape == (B, L, D)
    assert jnp.array_equal(attn_data, enc_in), "forward pass mismatch"

    # ---- banded-matmul kernel, lane-folded layout (D=32 not a 128-multiple) --
    res, mean = module.decomp(enc_in, force_pallas=True)
    _check_decomp(res, mean, enc_in, MOVING_AVG, "matmul/lane-fold")

    # ---- banded-matmul kernel, lane-aligned 3-D layout (D % 128 == 0) --------
    k1, k2 = jax.random.split(key)
    x_big = jax.random.normal(k1, (2, 48, 256), dtype=jnp.float32)
    res, mean = module.decomp(x_big, force_pallas=True)
    _check_decomp(res, mean, x_big, MOVING_AVG, "matmul/lane-aligned")

    # ---- direct-tap fallback kernel (used when (L, L) A no longer fits) ------
    x_taps = jax.random.normal(k2, (1, 64, 256), dtype=jnp.float32)
    res, mean = module.decomp(x_taps, force_pallas=True, _force_path="taps")
    _check_decomp(res, mean, x_taps, MOVING_AVG, "taps-fallback")

    # ---- small-input dispatcher (plain-XLA fast path) ------------------------
    res, mean = module.decomp(enc_in)
    _check_decomp(res, mean, enc_in, MOVING_AVG, "small-input fast path")

    print("KERNEL_OK")
</pallas_src>

<mosaic_0001>
module attributes {stable_mosaic.version = 11 : i64} {
  func.func @_decomp_matmul_kernel(%arg0: i32, %arg1: memref<32x32xf32, #tpu.memory_space<vmem>>, %arg2: memref<32x64xf32, #tpu.memory_space<vmem>>, %arg3: memref<32x64xf32, #tpu.memory_space<vmem>>, %arg4: memref<32x64xf32, #tpu.memory_space<vmem>>) attributes {dimension_semantics = [#tpu.dimension_semantics<parallel>], iteration_bounds = array<i64: 1>, scalar_prefetch = 0 : i64, scratch_operands = 0 : i64, tpu.core_type = #tpu.core_type<tc>, window_params = [{pipeline_mode = #tpu.pipeline_mode<synchronous>, transform_indices = @transform_0, window_bounds = array<i64: 32, 32>}, {transform_indices = @transform_1, window_bounds = array<i64: 32, 64>}, {transform_indices = @transform_2, window_bounds = array<i64: 32, 64>}, {transform_indices = @transform_3, window_bounds = array<i64: 32, 64>}]} {
    %c0 = arith.constant 0 : index
    %c0_0 = arith.constant 0 : index
    %0 = vector.load %arg2[%c0, %c0_0] : memref<32x64xf32, #tpu.memory_space<vmem>>, vector<32x64xf32>
    %c0_1 = arith.constant 0 : index
    %c0_2 = arith.constant 0 : index
    %1 = vector.load %arg1[%c0_1, %c0_2] : memref<32x32xf32, #tpu.memory_space<vmem>>, vector<32x32xf32>
    %cst = arith.constant dense<0.000000e+00> : vector<32x64xf32>
    %2 = tpu.matmul %1, %0, %cst {dimension_numbers = #tpu.dot_dimension_numbers<[1], [0], [0], [1], [0, 0, 1, 1], [], []>, precision = #tpu.contract_precision<fp32>} : vector<32x32xf32>, vector<32x64xf32>, vector<32x64xf32> -> vector<32x64xf32>
    %3 = arith.subf %0, %2 : vector<32x64xf32>
    %c0_3 = arith.constant 0 : index
    %c0_4 = arith.constant 0 : index
    %4 = vector.load %arg3[%c0_3, %c0_4] : memref<32x64xf32, #tpu.memory_space<vmem>>, vector<32x64xf32>
    tpu.vector_store %arg3[%c0_3, %c0_4], %3 {strides = array<i32>} : memref<32x64xf32, #tpu.memory_space<vmem>>, vector<32x64xf32>,
    %c0_5 = arith.constant 0 : index
    %c0_6 = arith.constant 0 : index
    %5 = vector.load %arg4[%c0_5, %c0_6] : memref<32x64xf32, #tpu.memory_space<vmem>>, vector<32x64xf32>
    tpu.vector_store %arg4[%c0_5, %c0_6], %2 {strides = array<i32>} : memref<32x64xf32, #tpu.memory_space<vmem>>, vector<32x64xf32>,
    return
  }
  func.func @transform_0(%arg0: i32) -> (i32, i32) {
    %c0_i32 = arith.constant 0 : i32
    %c0_i32_0 = arith.constant 0 : i32
    %c0_i32_1 = arith.constant 0 : i32
    return %c0_i32, %c0_i32_0 : i32, i32
  }
  func.func @transform_1(%arg0: i32) -> (i32, i32) {
    %c0_i32 = arith.constant 0 : i32
    %c0_i32_0 = arith.constant 0 : i32
    return %c0_i32, %arg0 : i32, i32
  }
  func.func @transform_2(%arg0: i32) -> (i32, i32) {
    %c0_i32 = arith.constant 0 : i32
    %c0_i32_0 = arith.constant 0 : i32
    return %c0_i32, %arg0 : i32, i32
  }
  func.func @transform_3(%arg0: i32) -> (i32, i32) {
    %c0_i32 = arith.constant 0 : i32
    %c0_i32_0 = arith.constant 0 : i32
    return %c0_i32, %arg0 : i32, i32
  }
}

</mosaic_0001>

<bundles_post_ra>
// kernel: tpu_custom_call.1
= control target key start
LH: loop header
LB: loop body
LE: loop exit
PB: predicated region body
PF: predicated region fallthrough
CT: control target
= control target key end

     0   :  { %9 = vsyncpa [#allocation3], 0  ;;  %s1212_s0 = inlined_call_operand.hbm [shape: f32[32,32], index: 0, kind: input, shape index: {}]   ;;  %s1213_s1 = inlined_call_operand.hbm [shape: f32[32,64], index: 1, kind: input, shape index: {}]   ;;  %s1214_s2 = inlined_call_operand.hbm [shape: f32[32,64], index: 2, kind: output, shape index: {0}]   ;;  %s1215_s3 = inlined_call_operand.hbm [shape: f32[32,64], index: 3, kind: output, shape index: {1}]  }
   0x1   :  { %10 = vsyncpa [#allocation6], 0 }
   0x2   :  { %11 = vsyncpa [#allocation4], 0 }
   0x3   :  { %12 = vsyncpa [#allocation9], 0  ;;  %s1027_s12 = smov [#allocation2]   ;;  %s931_s16 = scalar_lea.hbm %s1212_s0, 512 }
   0x4   :  { %s18_s13 = sshll.u32 %s1027_s12, 4  ;;  %p932_p0 = scmp.ne.s32.totalorder %s1212_s0, %s931_s16  ;;  %s19_s13 = int_to_ptr.vmem [resolvable:$true] %s18_s13 }
   0x5   :  { %p935_p1 = scmp.lt.u32.totalorder %s931_s16, %s1212_s0 }
   0x7   :  { %p937_p2 = pnand %p935_p1, %p932_p0 }
   0x9   :  { %940 = shalt.err (!%p937_p2)
}
   0xa   :  { %s941_s21 = scalar_lea.vmem %s19_s13, 512  ;;  %p946_p4 = scmp.lt.s32.totalorder %s19_s13, %s19_s13 }
   0xb   :  { %p942_p3 = scmp.ne.s32.totalorder %s19_s13, %s941_s21  ;;  %p947_p5 = scmp.lt.s32.totalorder %s941_s21, %s941_s21 }
   0xd   :  { %p948_p6 = por %p947_p5, %p946_p4 }
   0xf   :  { %p949_p7 = pnand %p948_p6, %p942_p3 }
  0x11   :  { %952 = shalt.err (!%p949_p7)
}
  0x12   :  { %s1028_s22 = smov 128   ;;  %s1029_s23 = smov 8  }
  0x13   :  { %24 = dma.hbm_to_vmem [thread:$0]  %s1212_s0, 512, %s19_s13, [#allocation3], %s1028_s22, %s1028_s22, %s1029_s23  }
  0x14   :  { %s1030_s26 = smov [#allocation5]   ;;  %s953_s30 = scalar_lea.hbm %s1213_s1, 512 }
  0x15   :  { %s30_s27 = sshll.u32 %s1030_s26, 4  ;;  %p954_p8 = scmp.ne.s32.totalorder %s1213_s1, %s953_s30  ;;  %s31_s27 = int_to_ptr.vmem [resolvable:$true] %s30_s27 }
  0x16   :  { %p957_p9 = scmp.lt.u32.totalorder %s953_s30, %s1213_s1 }
  0x18   :  { %p959_p10 = pnand %p957_p9, %p954_p8 }
  0x1a   :  { %962 = shalt.err (!%p959_p10)
}
  0x1b   :  { %s963_s8 = scalar_lea.vmem %s31_s27, 512  ;;  %p968_p12 = scmp.lt.s32.totalorder %s31_s27, %s31_s27 }
  0x1c   :  { %p964_p11 = scmp.ne.s32.totalorder %s31_s27, %s963_s8  ;;  %p969_p13 = scmp.lt.s32.totalorder %s963_s8, %s963_s8 }
  0x1e   :  { %p970_p0 = por %p969_p13, %p968_p12 }
  0x20   :  { %p971_p1 = pnand %p970_p0, %p964_p11 }
  0x22   :  { %974 = shalt.err (!%p971_p1)
}
  0x23   :  { %36 = dma.hbm_to_vmem [thread:$0]  %s1213_s1, 512, %s31_s27, [#allocation6], %s1028_s22, %s1028_s22, %s1029_s23  }
  0x24   :  { %1019 = dma.done.wait [#allocation3], 512  }
  0x25   :  { %1020 = vsyncadd [#allocation3], 4294966784 }
  0x26   :  { %1021 = dma.done.wait [#allocation6], 512  }
  0x27   :  { %1022 = vsyncadd [#allocation6], 4294966784  ;;  %vm51_vm0 = vcmask 261120   ;;  %v1083_v0 = vld [vmem:[#allocation5] sm:$0xff]  ;;  %v1085_v1 = vld [vmem:[#allocation5 + $0x8] sm:$0xff]  ;;  %vm682_vm1 = vcmask 523264  }
  0x28   :  { %v1087_v2 = vld [vmem:[#allocation5 + $0x10] sm:$0xff]  ;;  %v65_v3 = vand.u32 4294901760, %v1083_v0  ;;  %v68_v4 = vand.u32 4294901760, %v1085_v1  ;;  %v1091_v5 = vld [vmem:[#allocation5 + $0x18] sm:$0xff]  ;;  %v47_v7 = vld [vmem:[#allocation2] sm:$0xff]  ;;  %s1031_s1 = smov [#allocation8]  }
  0x29   :  { %v71_v6 = vand.u32 4294901760, %v1087_v2  ;;  %v48_v8 = vld [vmem:[#allocation2 + $0x8] sm:$0xff]  ;;  %v74_v9 = vand.u32 4294901760, %v1091_v5  ;;  %v53_v10 = vsel %vm51_vm0, %v47_v7, 0  ;;  %v49_v12 = vld [vmem:[#allocation2 + $0x10] sm:$0xff]  ;;  %v50_v13 = vld [vmem:[#allocation2 + $0x18] sm:$0xff] }
  0x2a   :  { %v56_v11 = vsel %vm51_vm0, %v48_v8, 0  ;;  %v1097_v14 = vpack.c.bf16 %v68_v4, %v65_v3  ;;  %v1099_v15 = vand.u32 4294901760, %v53_v10  ;;  %v175_v17 = vsub.f32 %v1083_v0, %v65_v3  ;;  %s708_s10 = sshll.u32 %s1031_s1, 4  ;;  %s1032_s11 = smov [#allocation7]   ;;  %s709_s10 = int_to_ptr.vmem [resolvable:$true] %s708_s10 }
  0x2b   :  { %v1101_v16 = vand.u32 4294901760, %v56_v11  ;;  %v1104_v18 = vpack.c.bf16 %v74_v9, %v71_v6  ;;  %v182_v19 = vsub.f32 %v1085_v1, %v68_v4  ;;  %v59_v20 = vsel %vm51_vm0, %v49_v12, 0  ;;  %s696_s12 = sshll.u32 %s1032_s11, 4  ;;  %s975_s13 = scalar_lea.vmem %s709_s10, 512  ;;  %s1173_s12 = int_to_ptr.vmem [resolvable:$true] %s696_s12 }
  0x2c   :  { %v62_v21 = vsel %vm51_vm0, %v50_v13, 0  ;;  %858 = vmatprep.subr.bf16.mxu1 %v1097_v14  ;;  %882 = vmatprep.subr.bf16.mxu0 %v1097_v14  ;;  %v1112_v22 = vsub.f32 %v53_v10, %v1099_v15  ;;  %v176_v24 = vand.u32 4294901760, %v175_v17  ;;  %v1117_v25 = vand.u32 4294901760, %v59_v20  ;;  %p976_p2 = scmp.ne.s32.totalorder %s709_s10, %s975_s13  ;;  %p980_p3 = scmp.lt.s32.totalorder %s709_s10, %s709_s10 }
  0x2d   :  { %v1115_v23 = vsub.f32 %v56_v11, %v1101_v16  ;;  %860 = vmatpush3.bf16.msra.mxu1 %v1097_v14  ;;  %884 = vmatpush3.bf16.msra.mxu0 %v1097_v14  ;;  %v183_v26 = vand.u32 4294901760, %v182_v19  ;;  %v1121_v27 = vand.u32 4294901760, %v62_v21  ;;  %v189_v28 = vsub.f32 %v1087_v2, %v71_v6  ;;  %p981_p4 = scmp.lt.s32.totalorder %s975_s13, %s975_s13 }
  0x2e   :  { %v196_v29 = vsub.f32 %v1091_v5, %v74_v9  ;;  %862 = vmatprep.subr.bf16.mxu1 %v1104_v18  ;;  %886 = vmatprep.subr.bf16.mxu0 %v1104_v18  ;;  %v135_v30 = vand.u32 4294901760, %v1112_v22  ;;  %v177_v32 = vsub.f32 %v175_v17, %v176_v24  ;;  %v1130_v33 = vsub.f32 %v59_v20, %v1117_v25 }
  0x2f   :  { %v145_v31 = vand.u32 4294901760, %v1115_v23  ;;  %v184_v34 = vsub.f32 %v182_v19, %v183_v26  ;;  %v889_v35 = vpack.c.bf16 %v183_v26, %v176_v24  ;;  %v1133_v36 = vsub.f32 %v62_v21, %v1121_v27  ;;  %p982_p5 = por %p981_p4, %p980_p3 }
  0x30   :  { %v190_v37 = vand.u32 4294901760, %v189_v28  ;;  %v136_v38 = vsub.f32 %v1112_v22, %v135_v30  ;;  %823 = vmatprep.mubr.f32.mxu0 %v135_v30  ;;  %v178_v40 = vand.u32 4294901760, %v177_v32  ;;  %v155_v41 = vand.u32 4294901760, %v1130_v33 }
  0x31   :  { %v146_v39 = vsub.f32 %v1115_v23, %v145_v31  ;;  %864 = vmatpush3.bf16.msra.mxu1 %v1104_v18  ;;  %888 = vmatpush3.bf16.msra.mxu0 %v1104_v18  ;;  %v185_v42 = vand.u32 4294901760, %v184_v34  ;;  %v165_v43 = vand.u32 4294901760, %v1133_v36  ;;  %v197_v45 = vand.u32 4294901760, %v196_v29  ;;  %p983_p6 = pnand %p982_p5, %p976_p2 }
  0x32   :  { %v191_v44 = vsub.f32 %v189_v28, %v190_v37  ;;  %v137_v46 = vand.u32 4294901760, %v136_v38  ;;  %890 = vmatprep.subr.bf16.mxu0 %v889_v35  ;;  %v156_v48 = vsub.f32 %v1130_v33, %v155_v41  ;;  %v873_v58 = vpack.c.bf16 %v182_v19, %v175_v17 }
  0x33   :  { %v147_v47 = vand.u32 4294901760, %v146_v39  ;;  %v865_v49 = vpack.c.bf16 %v185_v42, %v178_v40  ;;  %v166_v50 = vsub.f32 %v1133_v36, %v165_v43  ;;  %v198_v52 = vsub.f32 %v196_v29, %v197_v45 }
  0x34   :  { %v192_v51 = vand.u32 4294901760, %v191_v44  ;;  %781 = vmatprep.mubr.f32.mxu1 %v137_v46  ;;  %824 = vmatmul.mubr.f32.vlgmr.msra.gmra.mrb[0].mxu0 %v145_v31  ;;  %v157_v53 = vand.u32 4294901760, %v156_v48  ;;  %v893_v54 = vpack.c.bf16 %v197_v45, %v190_v37  ;;  %v877_v59 = vpack.c.bf16 %v196_v29, %v189_v28 }
  0x35   :  { %782 = vmatmul.mubr.f32.vlgmr.msra.gmra.mrb[0].mxu1 %v147_v47  ;;  %866 = vmatprep.subr.bf16.mxu1 %v865_v49  ;;  %v167_v55 = vand.u32 4294901760, %v166_v50  ;;  %v199_v56 = vand.u32 4294901760, %v198_v52 }
  0x36   :  { %868 = vmatpush3.bf16.msra.mxu1 %v865_v49  ;;  %892 = vmatpush3.bf16.msra.mxu0 %v889_v35 }
  0x37   :  { %784 = vmatprep.mubr.f32.mxu1 %v157_v53  ;;  %826 = vmatprep.mubr.f32.mxu0 %v155_v41  ;;  %v869_v57 = vpack.c.bf16 %v199_v56, %v192_v51 }
  0x38   :  { %827 = vmatmul.mubr.f32.gmra.mrb[2].mxu0 %v165_v43  ;;  %894 = vmatprep.subr.bf16.mxu0 %v893_v54 }
  0x39   :  { %785 = vmatmul.mubr.f32.gmra.mrb[2].mxu1 %v167_v55  ;;  %870 = vmatprep.subr.bf16.mxu1 %v869_v57 }
  0x3a   :  { %872 = vmatpush3.bf16.msra.mxu1 %v869_v57  ;;  %896 = vmatpush3.bf16.msra.mxu0 %v893_v54 }
  0x3b   :  { %795 = vmatprep.mubr.f32.mxu1 %v1099_v15  ;;  %837 = vmatprep.mubr.f32.mxu0 %v1099_v15 }
  0x3c   :  { %874 = vmatprep.subr.bf16.mxu1 %v873_v58  ;;  %898 = vmatprep.subr.bf16.mxu0 %v1097_v14 }
  0x3d   :  { %796 = vmatmul.mubr.f32.vlgmr.msra.gmra.mrb[0].mxu1 %v1101_v16  ;;  %838 = vmatmul.mubr.f32.vlgmr.msra.gmra.mrb[0].mxu0 %v1101_v16 }
  0x3e   :  { %876 = vmatpush3.bf16.msra.mxu1 %v873_v58  ;;  %900 = vmatpush3.bf16.msra.mxu0 %v1097_v14 }
  0x3f   :  { %798 = vmatprep.mubr.f32.mxu1 %v1117_v25  ;;  %840 = vmatprep.mubr.f32.mxu0 %v1117_v25 }
  0x40   :  { %878 = vmatprep.subr.bf16.mxu1 %v877_v59  ;;  %902 = vmatprep.subr.bf16.mxu0 %v1104_v18 }
  0x41   :  { %799 = vmatmul.mubr.f32.gmra.mrb[2].mxu1 %v1121_v27  ;;  %841 = vmatmul.mubr.f32.gmra.mrb[2].mxu0 %v1121_v27 }
  0x42   :  { %880 = vmatpush3.bf16.msra.mxu1 %v877_v59  ;;  %904 = vmatpush3.bf16.msra.mxu0 %v1104_v18 }
  0x43   :  { %809 = vmatprep.mubr.f32.mxu1 %v1112_v22  ;;  %851 = vmatprep.mubr.f32.mxu0 %v1099_v15 }
  0x45   :  { %810 = vmatmul.mubr.f32.vlgmr.msra.gmra.mrb[0].mxu1 %v1115_v23  ;;  %852 = vmatmul.mubr.f32.vlgmr.msra.gmra.mrb[0].mxu0 %v1101_v16 }
  0x46   :  { %812 = vmatprep.mubr.f32.mxu1 %v1130_v33  ;;  %854 = vmatprep.mubr.f32.mxu0 %v1117_v25 }
  0x49   :  { %813 = vmatmul.mubr.f32.gmra.mrb[2].mxu1 %v1133_v36  ;;  %855 = vmatmul.mubr.f32.gmra.mrb[2].mxu0 %v1121_v27 }
 0x118   :  { %v811_v60 = vpop.f32.mrb[0].mxu1  ;;  %v853_v61 = vpop.f32.mrb[0].mxu0 }
 0x119   :  { %v905_v62 = vadd.f32 %v853_v61, %v811_v60  ;;  %v358_v63 = vpop.f32.mrb[1].mxu1  ;;  %v656_v3 = vpop.f32.mrb[1].mxu0 }
 0x11a   :  { %v906_v4 = vadd.f32 %v656_v3, %v358_v63 }
 0x11b   :  { %v679_v6 = vsub.f32 %v1085_v1, %v905_v62  ;;  %688 = vst.msk [vmem:[#allocation8 + $0x8] sm:$0xff] %vm682_vm1, %v905_v62 }
 0x11c   :  { %v678_v7 = vsub.f32 %v1083_v0, %v906_v4  ;;  %687 = vst.msk [vmem:[#allocation8] sm:$0xff] %vm682_vm1, %v906_v4  ;;  %v814_v8 = vpop.f32.mrb[2].mxu1  ;;  %v856_v9 = vpop.f32.mrb[2].mxu0 }
 0x11d   :  { %684 = vst.msk [vmem:[#allocation7 + $0x8] sm:$0xff] %vm682_vm1, %v679_v6  ;;  %v907_v10 = vadd.f32 %v856_v9, %v814_v8  ;;  %v372_v11 = vpop.f32.mrb[3].mxu1  ;;  %v668_v12 = vpop.f32.mrb[3].mxu0 }
 0x11e   :  { %683 = vst.msk [vmem:[#allocation7] sm:$0xff] %vm682_vm1, %v678_v7  ;;  %v908_v1 = vadd.f32 %v668_v12, %v372_v11 }
 0x11f   :  { %v681_v13 = vsub.f32 %v1091_v5, %v907_v10  ;;  %690 = vst.msk [vmem:[#allocation8 + $0x18] sm:$0xff] %vm682_vm1, %v907_v10 }
 0x120   :  { %v680_v0 = vsub.f32 %v1087_v2, %v908_v1  ;;  %689 = vst.msk [vmem:[#allocation8 + $0x10] sm:$0xff] %vm682_vm1, %v908_v1 }
 0x121   :  { %686 = vst.msk [vmem:[#allocation7 + $0x18] sm:$0xff] %vm682_vm1, %v681_v13 }
 0x122   :  { %986 = shalt.err (!%p983_p6)
}
 0x123   :  { %s987_s16 = scalar_lea.hbm %s1215_s3, 512 }
 0x124   :  { %p988_p7 = scmp.ne.s32.totalorder %s1215_s3, %s987_s16  ;;  %p991_p8 = scmp.lt.u32.totalorder %s987_s16, %s1215_s3 }
 0x126   :  { %p993_p9 = pnand %p991_p8, %p988_p7 }
 0x128   :  { %996 = shalt.err (!%p993_p9)
}
 0x129   :  { %714 = dma.vmem_to_hbm [thread:$0]  %s709_s10, 512, %s1215_s3, [#allocation9], %s1028_s22, %s1028_s22, %s1029_s23   ;;  %685 = vst.msk [vmem:[#allocation7 + $0x10] sm:$0xff] %vm682_vm1, %v680_v0 }
 0x12a   :  { %s997_s25 = scalar_lea.vmem %s1173_s12, 512  ;;  %p1002_p11 = scmp.lt.s32.totalorder %s1173_s12, %s1173_s12 }
 0x12b   :  { %p998_p10 = scmp.ne.s32.totalorder %s1173_s12, %s997_s25  ;;  %p1003_p12 = scmp.lt.s32.totalorder %s997_s25, %s997_s25 }
 0x12d   :  { %p1004_p13 = por %p1003_p12, %p1002_p11 }
 0x12f   :  { %p1005_p0 = pnand %p1004_p13, %p998_p10 }
 0x131   :  { %1008 = shalt.err (!%p1005_p0)
}
 0x132   :  { %s1009_s28 = scalar_lea.hbm %s1214_s2, 512 }
 0x133   :  { %p1010_p1 = scmp.ne.s32.totalorder %s1214_s2, %s1009_s28  ;;  %p1013_p2 = scmp.lt.u32.totalorder %s1009_s28, %s1214_s2 }
 0x135   :  { %p1015_p3 = pnand %p1013_p2, %p1010_p1 }
 0x137   :  { %1018 = shalt.err (!%p1015_p3)
}
 0x138   :  { %702 = dma.vmem_to_hbm [thread:$0]  %s1173_s12, 512, %s1214_s2, [#allocation4], %s1028_s22, %s1028_s22, %s1029_s23  }
 0x139   :  { %1023 = dma.done.wait [#allocation4], 512  }
 0x13a   :  { %1024 = vsyncadd [#allocation4], 4294966784 }
 0x13b   :  { %1025 = dma.done.wait [#allocation9], 512  }
 0x13c   :  { %1026 = vsyncadd [#allocation9], 4294966784 }
 0x13d   :  { %721 = vsyncpa [#allocation3], 1 }
 0x13e   :  { %722 = vsyncpa [#allocation6], 1 }
 0x13f   :  { %723 = vsyncpa [#allocation4], 1 }
 0x140   :  { %724 = vsyncpa [#allocation9], 1 }

</bundles_post_ra>
